<compile_context>
chip_gen: v6e
topology: v6e:2x2x1
jax: 0.10.0
libtpu: 0.0.40
codegen_flags: <defaults>
</compile_context>

<pallas_src>
import math

import numpy as np
import jax
import jax.numpy as jnp
from jax import lax
from jax.experimental import pallas as pl
from jax.experimental.pallas import tpu as pltpu

# ----------------------------- physical constants ---------------------------
PAI = 3.141592653589793
C_LIGHT = 299792458.0
MU0 = 4.0 * PAI * 1e-07
EPSILON0 = 1.0 / (C_LIGHT ** 2 * MU0)

LANES = 128
CHUNK_ROWS = 16       # compute strip: 2 vregs / intermediate, ~30-40 live vregs
MIN_GRID_STEPS = 2    # so v7x megacore ("parallel" axis over 2 TCs) engages

# Unique complex components written by the kernel (channel = 2*u + {0:re,1:im}):
#   u: 0=xx  1=xy  2=xz  3=yy  4=yz  5=zz
# Expansion to xx,xy,xz,yx,yy,yz,zx,zy,zz (each re,im) for the module's format:
_CHAN_IDX = np.array([0, 1, 2, 3, 4, 5, 2, 3, 6, 7, 8, 9, 4, 5, 8, 9, 10, 11],
                     dtype=np.int32)


def _round_up(x: int, m: int) -> int:
    return ((x + m - 1) // m) * m


def _select_tiling():
    """Generation-aware (tile_rows, vmem_limit_bytes)."""
    vmem_bytes = None
    try:
        info = pltpu.get_tpu_info()
        vmem_bytes = getattr(info, "vmem_capacity_bytes", None)
    except Exception:
        vmem_bytes = None
    if isinstance(vmem_bytes, (int, float)) and vmem_bytes >= (100 << 20):
        # v5e / v6e: 128 MiB VMEM -> big DMA steps amortize per-step overhead.
        # (6+12) ch * 1024 * 128 * 4 B = 9 MiB/step, ~18 MiB double-buffered.
        return 1024, 64 << 20
    # v7x (64 MiB per TC) or unknown hardware: conservative.
    return 512, 40 << 20


def _make_green_kernel(freq: float):
    omega = 2.0 * PAI * freq
    k = omega * math.sqrt(MU0 * EPSILON0)
    coeff_imag = -omega * MU0
    inv_k = 1.0 / k
    inv_k2 = 1.0 / (k * k)
    scale = 1.0 / 1000.0
    cs = coeff_imag * scale                 # fold coeff_imag and /1000
    common_const = cs / (4.0 * PAI)         # folded into 1/(4*pi*r^3)
    neg_inv_k = -inv_k
    three_inv_k2 = 3.0 * inv_k2
    three_inv_k = 3.0 * inv_k

    def green_kernel(coords_ref, out_ref):
        # coords_ref: (6, tile_rows, 128) = tx,ty,tz,rx,ry,rz
        # out_ref:    (12, tile_rows, 128) = 6 unique components x (re, im)
        n_chunks = coords_ref.shape[1] // CHUNK_ROWS

        def chunk(ci, carry):
            row0 = pl.multiple_of(ci * CHUNK_ROWS, CHUNK_ROWS)
            sl = pl.ds(row0, CHUNK_ROWS)

            dx = coords_ref[0, sl, :] - coords_ref[3, sl, :]
            dy = coords_ref[1, sl, :] - coords_ref[4, sl, :]
            dz = coords_ref[2, sl, :] - coords_ref[5, sl, :]

            r2 = dx * dx + dy * dy + dz * dz
            inv_r = lax.rsqrt(r2)           # single EUP op (separate VLIW slot)
            inv_r2 = inv_r * inv_r
            # sqrt kept (EUP, hidden under HBM) so the phase k*r matches the
            # f32 reference; r2*inv_r's ~ulp error * k*r~O(100) would break
            # atol=1e-6 near the zeros of cos(k*r + phi).
            r = jnp.sqrt(r2)

            phase = -k * r
            cos_p = jnp.cos(phase)
            sin_p = jnp.sin(phase)
            # TODO(synk): fused sincos with one shared range reduction would
            # cut ~20-30% of the trig cost on v7x where the kernel nears the
            # VALU roofline; neutral on HBM-bound v5e/v6e.

            common = inv_r * inv_r2 * common_const   # cs / (4*pi*r^3)
            A = cos_p * common
            B = sin_p * common
            nA = -A
            nB = -B

            h1_real = r2 - inv_k2
            h1_imag = r * neg_inv_k
            h2_real = inv_r2 * three_inv_k2 - 1.0
            h2_imag = inv_r * three_inv_k

            def emit(u, gr, gi):
                # G_real/1000 and G_imag/1000 with constants pre-folded into A/B
                out_ref[2 * u, sl, :] = nA * gi + nB * gr      # real
                out_ref[2 * u + 1, sl, :] = A * gr - B * gi    # imag

            dxdx = dx * dx
            dydy = dy * dy
            dzdz = dz * dz
            dxdy = dx * dy
            dxdz = dx * dz
            dydz = dy * dz

            emit(0, h1_real + dxdx * h2_real, h1_imag + dxdx * h2_imag)  # xx
            emit(1, dxdy * h2_real, dxdy * h2_imag)                      # xy (=yx)
            emit(2, dxdz * h2_real, dxdz * h2_imag)                      # xz (=zx)
            emit(3, h1_real + dydy * h2_real, h1_imag + dydy * h2_imag)  # yy
            emit(4, dydz * h2_real, dydz * h2_imag)                      # yz (=zy)
            emit(5, h1_real + dzdz * h2_real, h1_imag + dzdz * h2_imag)  # zz
            return carry

        lax.fori_loop(0, n_chunks, chunk, 0)

    return green_kernel


def green_layer_pallas(x: jax.Array, freq: float) -> jax.Array:
    """x: (2, *lead, 3) float32 -> G: (*lead, 9, 2) float32."""
    x = x.astype(jnp.float32)
    lead_shape = x.shape[1:-1]
    n = 1
    for d in lead_shape:
        n *= d

    target_tile_rows, vmem_limit = _select_tiling()

    rows_needed = max(pl.cdiv(n, LANES), 1)
    tile_rows = min(target_tile_rows, _round_up(rows_needed, CHUNK_ROWS))
    tile_rows = _round_up(tile_rows, CHUNK_ROWS)
    # Keep >=2 grid steps when possible (v7x: 2 TensorCores shard the
    # "parallel" axis; on 1-TC chips the extra step costs ~0.35 us).
    while (pl.cdiv(rows_needed, tile_rows) < MIN_GRID_STEPS
           and tile_rows > CHUNK_ROWS):
        tile_rows = max(CHUNK_ROWS, _round_up(tile_rows // 2, CHUNK_ROWS))
    rows = pl.cdiv(rows_needed, tile_rows) * tile_rows
    n_pad = rows * LANES

    # One-pass input re-layout: (2, n, 3) -> channel-major (6, n); pad only the
    # tail (tloc->1, rloc->0 so r != 0 in padding) and fold to (6, rows, 128).
    coords6 = jnp.transpose(x.reshape(2, n, 3), (0, 2, 1)).reshape(6, n)
    if n_pad > n:
        pad_col = jnp.array([1.0, 1.0, 1.0, 0.0, 0.0, 0.0],
                            jnp.float32)[:, None]
        coords6 = jnp.concatenate(
            [coords6, jnp.broadcast_to(pad_col, (6, n_pad - n))], axis=1)
    coords = coords6.reshape(6, rows, LANES)

    kernel = _make_green_kernel(freq)
    out = pl.pallas_call(
        kernel,
        out_shape=jax.ShapeDtypeStruct((12, rows, LANES), jnp.float32),
        grid_spec=pltpu.PrefetchScalarGridSpec(
            num_scalar_prefetch=0,
            grid=(rows // tile_rows,),
            in_specs=[pl.BlockSpec((6, tile_rows, LANES), lambda i: (0, i, 0))],
            out_specs=pl.BlockSpec((12, tile_rows, LANES), lambda i: (0, i, 0)),
        ),
        compiler_params=pltpu.CompilerParams(
            dimension_semantics=("parallel",),
            vmem_limit_bytes=vmem_limit),
    )(coords)

    # Re-layout to the module's (*lead, 9, 2) format.  Padding is sliced off
    # BEFORE the transpose, and the symmetric off-diagonals are expanded in the
    # same gather, so only the n valid points (12 + 18 channels) are touched.
    # A downstream consumer able to take channel-major (12, n) should use
    # `out12` directly and skip this entirely.
    out12 = out.reshape(12, n_pad)[:, :n]
    G = jnp.take(out12.T, jnp.asarray(_CHAN_IDX), axis=1).reshape(n, 9, 2)
    return G.reshape(*lead_shape, 9, 2)


def green_layer_ref(x: jax.Array, freq: float) -> jax.Array:
    """Pure-JAX reference mirroring the PyTorch forward."""
    omega = 2.0 * PAI * freq
    k = omega * math.sqrt(MU0 * EPSILON0)
    tloc, rloc = x[0], x[1]
    dx = tloc[..., 0] - rloc[..., 0]
    dy = tloc[..., 1] - rloc[..., 1]
    dz = tloc[..., 2] - rloc[..., 2]
    r = jnp.sqrt(dx ** 2 + dy ** 2 + dz ** 2)
    g_real = jnp.cos(-k * r) / (4 * PAI * r)
    g_imag = jnp.sin(-k * r) / (4 * PAI * r)
    coeff_imag = -omega * MU0
    h1_real = r ** 2 - 1 / k ** 2
    h1_imag = -r / k
    h2_real = -1 + 3 / (k ** 2 * r ** 2)
    h2_imag = 3 / (k * r)
    Gr = jnp.stack([
        h1_real + dx ** 2 * h2_real, dx * dy * h2_real, dx * dz * h2_real,
        dx * dy * h2_real, h1_real + dy ** 2 * h2_real, dy * dz * h2_real,
        dx * dz * h2_real, dy * dz * h2_real, h1_real + dz ** 2 * h2_real,
    ], axis=-1)
    Gi = jnp.stack([
        h1_imag + dx ** 2 * h2_imag, dx * dy * h2_imag, dx * dz * h2_imag,
        dx * dy * h2_imag, h1_imag + dy ** 2 * h2_imag, dy * dz * h2_imag,
        dx * dz * h2_imag, dy * dz * h2_imag, h1_imag + dz ** 2 * h2_imag,
    ], axis=-1)
    r_ = r[..., None]
    gr_ = g_real[..., None]
    gi_ = g_imag[..., None]
    G_imag = (gr_ / r_ ** 2 * Gr - gi_ / r_ ** 2 * Gi) * coeff_imag
    G_real = (gr_ / r_ ** 2 * Gi + gi_ / r_ ** 2 * Gr) * -coeff_imag
    return jnp.stack([G_real, G_imag], axis=-1) / 1000.0


if __name__ == "__main__":
    freq = 1.0e9  # 1 GHz

    key = jax.random.PRNGKey(0)
    k1, k2 = jax.random.split(key)
    # x: (2, batch, points, 3) — x[0]=tloc, x[1]=rloc; keep t and r well separated
    batch, points = 4, 16
    tloc = jax.random.uniform(k1, (batch, points, 3), jnp.float32,
                              minval=1.0, maxval=2.0)
    rloc = jax.random.uniform(k2, (batch, points, 3), jnp.float32,
                              minval=-2.0, maxval=-1.0)
    x = jnp.stack([tloc, rloc], axis=0)  # (2, 4, 16, 3)

    G = jax.block_until_ready(green_layer_pallas(x, freq))
    G_ref = green_layer_ref(x, freq)

    assert G.shape == (batch, points, 9, 2), G.shape
    assert jnp.allclose(G, G_ref, rtol=1e-4, atol=1e-6), "mismatch vs reference"

    print("KERNEL_OK")
</pallas_src>

<mosaic_0001>
module attributes {stable_mosaic.version = 11 : i64} {
  func.func @green_kernel(%arg0: i32, %arg1: memref<6x16x128xf32, #tpu.memory_space<vmem>>, %arg2: memref<12x16x128xf32, #tpu.memory_space<vmem>>) attributes {dimension_semantics = [#tpu.dimension_semantics<parallel>], iteration_bounds = array<i64: 1>, scalar_prefetch = 0 : i64, scratch_operands = 0 : i64, tpu.core_type = #tpu.core_type<tc>, window_params = [{transform_indices = @transform_0, window_bounds = array<i64: 6, 16, 128>}, {transform_indices = @transform_1, window_bounds = array<i64: 12, 16, 128>}]} {
    %c0_i32 = arith.constant 0 : i32
    %c16_i32 = arith.constant 16 : i32
    %0 = arith.muli %c0_i32, %c16_i32 : i32
    %1 = tpu.assume_multiple %0, 16 : i32
    %c0 = arith.constant 0 : index
    %2 = arith.index_cast %1 : i32 to index
    %c0_0 = arith.constant 0 : index
    %3 = vector.load %arg1[%c0, %2, %c0_0] : memref<6x16x128xf32, #tpu.memory_space<vmem>>, vector<1x16x128xf32>
    %4 = vector.shape_cast %3 : vector<1x16x128xf32> to vector<16x128xf32>
    %c3 = arith.constant 3 : index
    %5 = arith.index_cast %1 : i32 to index
    %c0_1 = arith.constant 0 : index
    %6 = vector.load %arg1[%c3, %5, %c0_1] : memref<6x16x128xf32, #tpu.memory_space<vmem>>, vector<1x16x128xf32>
    %7 = vector.shape_cast %6 : vector<1x16x128xf32> to vector<16x128xf32>
    %8 = arith.subf %4, %7 : vector<16x128xf32>
    %c1 = arith.constant 1 : index
    %9 = arith.index_cast %1 : i32 to index
    %c0_2 = arith.constant 0 : index
    %10 = vector.load %arg1[%c1, %9, %c0_2] : memref<6x16x128xf32, #tpu.memory_space<vmem>>, vector<1x16x128xf32>
    %11 = vector.shape_cast %10 : vector<1x16x128xf32> to vector<16x128xf32>
    %c4 = arith.constant 4 : index
    %12 = arith.index_cast %1 : i32 to index
    %c0_3 = arith.constant 0 : index
    %13 = vector.load %arg1[%c4, %12, %c0_3] : memref<6x16x128xf32, #tpu.memory_space<vmem>>, vector<1x16x128xf32>
    %14 = vector.shape_cast %13 : vector<1x16x128xf32> to vector<16x128xf32>
    %15 = arith.subf %11, %14 : vector<16x128xf32>
    %c2 = arith.constant 2 : index
    %16 = arith.index_cast %1 : i32 to index
    %c0_4 = arith.constant 0 : index
    %17 = vector.load %arg1[%c2, %16, %c0_4] : memref<6x16x128xf32, #tpu.memory_space<vmem>>, vector<1x16x128xf32>
    %18 = vector.shape_cast %17 : vector<1x16x128xf32> to vector<16x128xf32>
    %c5 = arith.constant 5 : index
    %19 = arith.index_cast %1 : i32 to index
    %c0_5 = arith.constant 0 : index
    %20 = vector.load %arg1[%c5, %19, %c0_5] : memref<6x16x128xf32, #tpu.memory_space<vmem>>, vector<1x16x128xf32>
    %21 = vector.shape_cast %20 : vector<1x16x128xf32> to vector<16x128xf32>
    %22 = arith.subf %18, %21 : vector<16x128xf32>
    %23 = arith.mulf %8, %8 : vector<16x128xf32>
    %24 = arith.mulf %15, %15 : vector<16x128xf32>
    %25 = arith.addf %23, %24 : vector<16x128xf32>
    %26 = arith.mulf %22, %22 : vector<16x128xf32>
    %27 = arith.addf %25, %26 : vector<16x128xf32>
    %28 = math.rsqrt %27 : vector<16x128xf32>
    %29 = arith.mulf %28, %28 : vector<16x128xf32>
    %30 = math.sqrt %27 : vector<16x128xf32>
    %cst = arith.constant -20.9584503 : f32
    %31 = vector.broadcast %cst : f32 to vector<16x128xf32>
    %32 = arith.mulf %31, %30 : vector<16x128xf32>
    %33 = math.cos %32 : vector<16x128xf32>
    %34 = math.sin %32 : vector<16x128xf32>
    %35 = arith.mulf %28, %29 : vector<16x128xf32>
    %cst_6 = arith.constant -0.628318548 : f32
    %36 = vector.broadcast %cst_6 : f32 to vector<16x128xf32>
    %37 = arith.mulf %35, %36 : vector<16x128xf32>
    %38 = arith.mulf %33, %37 : vector<16x128xf32>
    %39 = arith.mulf %34, %37 : vector<16x128xf32>
    %cst_7 = arith.constant 0.000000e+00 : f32
    %40 = vector.broadcast %cst_7 : f32 to vector<16x128xf32>
    %41 = arith.subf %40, %38 : vector<16x128xf32>
    %cst_8 = arith.constant 0.000000e+00 : f32
    %42 = vector.broadcast %cst_8 : f32 to vector<16x128xf32>
    %43 = arith.subf %42, %39 : vector<16x128xf32>
    %cst_9 = arith.constant 0.00227657356 : f32
    %44 = vector.broadcast %cst_9 : f32 to vector<16x128xf32>
    %45 = arith.subf %27, %44 : vector<16x128xf32>
    %cst_10 = arith.constant -0.0477134511 : f32
    %46 = vector.broadcast %cst_10 : f32 to vector<16x128xf32>
    %47 = arith.mulf %30, %46 : vector<16x128xf32>
    %cst_11 = arith.constant 0.00682972046 : f32
    %48 = vector.broadcast %cst_11 : f32 to vector<16x128xf32>
    %49 = arith.mulf %29, %48 : vector<16x128xf32>
    %cst_12 = arith.constant 1.000000e+00 : f32
    %50 = vector.broadcast %cst_12 : f32 to vector<16x128xf32>
    %51 = arith.subf %49, %50 : vector<16x128xf32>
    %cst_13 = arith.constant 0.143140361 : f32
    %52 = vector.broadcast %cst_13 : f32 to vector<16x128xf32>
    %53 = arith.mulf %28, %52 : vector<16x128xf32>
    %54 = arith.mulf %8, %8 : vector<16x128xf32>
    %55 = arith.mulf %15, %15 : vector<16x128xf32>
    %56 = arith.mulf %22, %22 : vector<16x128xf32>
    %57 = arith.mulf %8, %15 : vector<16x128xf32>
    %58 = arith.mulf %8, %22 : vector<16x128xf32>
    %59 = arith.mulf %15, %22 : vector<16x128xf32>
    %60 = arith.mulf %54, %51 : vector<16x128xf32>
    %61 = arith.addf %45, %60 : vector<16x128xf32>
    %62 = arith.mulf %54, %53 : vector<16x128xf32>
    %63 = arith.addf %47, %62 : vector<16x128xf32>
    %64 = arith.mulf %41, %63 : vector<16x128xf32>
    %65 = arith.mulf %43, %61 : vector<16x128xf32>
    %66 = arith.addf %64, %65 : vector<16x128xf32>
    %c0_14 = arith.constant 0 : index
    %67 = arith.index_cast %1 : i32 to index
    %c0_15 = arith.constant 0 : index
    %68 = vector.load %arg2[%c0_14, %67, %c0_15] : memref<12x16x128xf32, #tpu.memory_space<vmem>>, vector<1x16x128xf32>
    %69 = vector.shape_cast %68 : vector<1x16x128xf32> to vector<16x128xf32>
    %70 = vector.shape_cast %66 : vector<16x128xf32> to vector<1x16x128xf32>
    tpu.vector_store %arg2[%c0_14, %67, %c0_15], %70 {strides = array<i32>} : memref<12x16x128xf32, #tpu.memory_space<vmem>>, vector<1x16x128xf32>,
    %71 = arith.mulf %38, %61 : vector<16x128xf32>
    %72 = arith.mulf %39, %63 : vector<16x128xf32>
    %73 = arith.subf %71, %72 : vector<16x128xf32>
    %c1_16 = arith.constant 1 : index
    %74 = arith.index_cast %1 : i32 to index
    %c0_17 = arith.constant 0 : index
    %75 = vector.load %arg2[%c1_16, %74, %c0_17] : memref<12x16x128xf32, #tpu.memory_space<vmem>>, vector<1x16x128xf32>
    %76 = vector.shape_cast %75 : vector<1x16x128xf32> to vector<16x128xf32>
    %77 = vector.shape_cast %73 : vector<16x128xf32> to vector<1x16x128xf32>
    tpu.vector_store %arg2[%c1_16, %74, %c0_17], %77 {strides = array<i32>} : memref<12x16x128xf32, #tpu.memory_space<vmem>>, vector<1x16x128xf32>,
    %78 = arith.mulf %57, %51 : vector<16x128xf32>
    %79 = arith.mulf %57, %53 : vector<16x128xf32>
    %80 = arith.mulf %41, %79 : vector<16x128xf32>
    %81 = arith.mulf %43, %78 : vector<16x128xf32>
    %82 = arith.addf %80, %81 : vector<16x128xf32>
    %c2_18 = arith.constant 2 : index
    %83 = arith.index_cast %1 : i32 to index
    %c0_19 = arith.constant 0 : index
    %84 = vector.load %arg2[%c2_18, %83, %c0_19] : memref<12x16x128xf32, #tpu.memory_space<vmem>>, vector<1x16x128xf32>
    %85 = vector.shape_cast %84 : vector<1x16x128xf32> to vector<16x128xf32>
    %86 = vector.shape_cast %82 : vector<16x128xf32> to vector<1x16x128xf32>
    tpu.vector_store %arg2[%c2_18, %83, %c0_19], %86 {strides = array<i32>} : memref<12x16x128xf32, #tpu.memory_space<vmem>>, vector<1x16x128xf32>,
    %87 = arith.mulf %38, %78 : vector<16x128xf32>
    %88 = arith.mulf %39, %79 : vector<16x128xf32>
    %89 = arith.subf %87, %88 : vector<16x128xf32>
    %c3_20 = arith.constant 3 : index
    %90 = arith.index_cast %1 : i32 to index
    %c0_21 = arith.constant 0 : index
    %91 = vector.load %arg2[%c3_20, %90, %c0_21] : memref<12x16x128xf32, #tpu.memory_space<vmem>>, vector<1x16x128xf32>
    %92 = vector.shape_cast %91 : vector<1x16x128xf32> to vector<16x128xf32>
    %93 = vector.shape_cast %89 : vector<16x128xf32> to vector<1x16x128xf32>
    tpu.vector_store %arg2[%c3_20, %90, %c0_21], %93 {strides = array<i32>} : memref<12x16x128xf32, #tpu.memory_space<vmem>>, vector<1x16x128xf32>,
    %94 = arith.mulf %58, %51 : vector<16x128xf32>
    %95 = arith.mulf %58, %53 : vector<16x128xf32>
    %96 = arith.mulf %41, %95 : vector<16x128xf32>
    %97 = arith.mulf %43, %94 : vector<16x128xf32>
    %98 = arith.addf %96, %97 : vector<16x128xf32>
    %c4_22 = arith.constant 4 : index
    %99 = arith.index_cast %1 : i32 to index
    %c0_23 = arith.constant 0 : index
    %100 = vector.load %arg2[%c4_22, %99, %c0_23] : memref<12x16x128xf32, #tpu.memory_space<vmem>>, vector<1x16x128xf32>
    %101 = vector.shape_cast %100 : vector<1x16x128xf32> to vector<16x128xf32>
    %102 = vector.shape_cast %98 : vector<16x128xf32> to vector<1x16x128xf32>
    tpu.vector_store %arg2[%c4_22, %99, %c0_23], %102 {strides = array<i32>} : memref<12x16x128xf32, #tpu.memory_space<vmem>>, vector<1x16x128xf32>,
    %103 = arith.mulf %38, %94 : vector<16x128xf32>
    %104 = arith.mulf %39, %95 : vector<16x128xf32>
    %105 = arith.subf %103, %104 : vector<16x128xf32>
    %c5_24 = arith.constant 5 : index
    %106 = arith.index_cast %1 : i32 to index
    %c0_25 = arith.constant 0 : index
    %107 = vector.load %arg2[%c5_24, %106, %c0_25] : memref<12x16x128xf32, #tpu.memory_space<vmem>>, vector<1x16x128xf32>
    %108 = vector.shape_cast %107 : vector<1x16x128xf32> to vector<16x128xf32>
    %109 = vector.shape_cast %105 : vector<16x128xf32> to vector<1x16x128xf32>
    tpu.vector_store %arg2[%c5_24, %106, %c0_25], %109 {strides = array<i32>} : memref<12x16x128xf32, #tpu.memory_space<vmem>>, vector<1x16x128xf32>,
    %110 = arith.mulf %55, %51 : vector<16x128xf32>
    %111 = arith.addf %45, %110 : vector<16x128xf32>
    %112 = arith.mulf %55, %53 : vector<16x128xf32>
    %113 = arith.addf %47, %112 : vector<16x128xf32>
    %114 = arith.mulf %41, %113 : vector<16x128xf32>
    %115 = arith.mulf %43, %111 : vector<16x128xf32>
    %116 = arith.addf %114, %115 : vector<16x128xf32>
    %c6 = arith.constant 6 : index
    %117 = arith.index_cast %1 : i32 to index
    %c0_26 = arith.constant 0 : index
    %118 = vector.load %arg2[%c6, %117, %c0_26] : memref<12x16x128xf32, #tpu.memory_space<vmem>>, vector<1x16x128xf32>
    %119 = vector.shape_cast %118 : vector<1x16x128xf32> to vector<16x128xf32>
    %120 = vector.shape_cast %116 : vector<16x128xf32> to vector<1x16x128xf32>
    tpu.vector_store %arg2[%c6, %117, %c0_26], %120 {strides = array<i32>} : memref<12x16x128xf32, #tpu.memory_space<vmem>>, vector<1x16x128xf32>,
    %121 = arith.mulf %38, %111 : vector<16x128xf32>
    %122 = arith.mulf %39, %113 : vector<16x128xf32>
    %123 = arith.subf %121, %122 : vector<16x128xf32>
    %c7 = arith.constant 7 : index
    %124 = arith.index_cast %1 : i32 to index
    %c0_27 = arith.constant 0 : index
    %125 = vector.load %arg2[%c7, %124, %c0_27] : memref<12x16x128xf32, #tpu.memory_space<vmem>>, vector<1x16x128xf32>
    %126 = vector.shape_cast %125 : vector<1x16x128xf32> to vector<16x128xf32>
    %127 = vector.shape_cast %123 : vector<16x128xf32> to vector<1x16x128xf32>
    tpu.vector_store %arg2[%c7, %124, %c0_27], %127 {strides = array<i32>} : memref<12x16x128xf32, #tpu.memory_space<vmem>>, vector<1x16x128xf32>,
    %128 = arith.mulf %59, %51 : vector<16x128xf32>
    %129 = arith.mulf %59, %53 : vector<16x128xf32>
    %130 = arith.mulf %41, %129 : vector<16x128xf32>
    %131 = arith.mulf %43, %128 : vector<16x128xf32>
    %132 = arith.addf %130, %131 : vector<16x128xf32>
    %c8 = arith.constant 8 : index
    %133 = arith.index_cast %1 : i32 to index
    %c0_28 = arith.constant 0 : index
    %134 = vector.load %arg2[%c8, %133, %c0_28] : memref<12x16x128xf32, #tpu.memory_space<vmem>>, vector<1x16x128xf32>
    %135 = vector.shape_cast %134 : vector<1x16x128xf32> to vector<16x128xf32>
    %136 = vector.shape_cast %132 : vector<16x128xf32> to vector<1x16x128xf32>
    tpu.vector_store %arg2[%c8, %133, %c0_28], %136 {strides = array<i32>} : memref<12x16x128xf32, #tpu.memory_space<vmem>>, vector<1x16x128xf32>,
    %137 = arith.mulf %38, %128 : vector<16x128xf32>
    %138 = arith.mulf %39, %129 : vector<16x128xf32>
    %139 = arith.subf %137, %138 : vector<16x128xf32>
    %c9 = arith.constant 9 : index
    %140 = arith.index_cast %1 : i32 to index
    %c0_29 = arith.constant 0 : index
    %141 = vector.load %arg2[%c9, %140, %c0_29] : memref<12x16x128xf32, #tpu.memory_space<vmem>>, vector<1x16x128xf32>
    %142 = vector.shape_cast %141 : vector<1x16x128xf32> to vector<16x128xf32>
    %143 = vector.shape_cast %139 : vector<16x128xf32> to vector<1x16x128xf32>
    tpu.vector_store %arg2[%c9, %140, %c0_29], %143 {strides = array<i32>} : memref<12x16x128xf32, #tpu.memory_space<vmem>>, vector<1x16x128xf32>,
    %144 = arith.mulf %56, %51 : vector<16x128xf32>
    %145 = arith.addf %45, %144 : vector<16x128xf32>
    %146 = arith.mulf %56, %53 : vector<16x128xf32>
    %147 = arith.addf %47, %146 : vector<16x128xf32>
    %148 = arith.mulf %41, %147 : vector<16x128xf32>
    %149 = arith.mulf %43, %145 : vector<16x128xf32>
    %150 = arith.addf %148, %149 : vector<16x128xf32>
    %c10 = arith.constant 10 : index
    %151 = arith.index_cast %1 : i32 to index
    %c0_30 = arith.constant 0 : index
    %152 = vector.load %arg2[%c10, %151, %c0_30] : memref<12x16x128xf32, #tpu.memory_space<vmem>>, vector<1x16x128xf32>
    %153 = vector.shape_cast %152 : vector<1x16x128xf32> to vector<16x128xf32>
    %154 = vector.shape_cast %150 : vector<16x128xf32> to vector<1x16x128xf32>
    tpu.vector_store %arg2[%c10, %151, %c0_30], %154 {strides = array<i32>} : memref<12x16x128xf32, #tpu.memory_space<vmem>>, vector<1x16x128xf32>,
    %155 = arith.mulf %38, %145 : vector<16x128xf32>
    %156 = arith.mulf %39, %147 : vector<16x128xf32>
    %157 = arith.subf %155, %156 : vector<16x128xf32>
    %c11 = arith.constant 11 : index
    %158 = arith.index_cast %1 : i32 to index
    %c0_31 = arith.constant 0 : index
    %159 = vector.load %arg2[%c11, %158, %c0_31] : memref<12x16x128xf32, #tpu.memory_space<vmem>>, vector<1x16x128xf32>
    %160 = vector.shape_cast %159 : vector<1x16x128xf32> to vector<16x128xf32>
    %161 = vector.shape_cast %157 : vector<16x128xf32> to vector<1x16x128xf32>
    tpu.vector_store %arg2[%c11, %158, %c0_31], %161 {strides = array<i32>} : memref<12x16x128xf32, #tpu.memory_space<vmem>>, vector<1x16x128xf32>,
    %c1_i32 = arith.constant 1 : i32
    return
  }
  func.func @transform_0(%arg0: i32) -> (i32, i32, i32) {
    %c0_i32 = arith.constant 0 : i32
    %c0_i32_0 = arith.constant 0 : i32
    %c0_i32_1 = arith.constant 0 : i32
    return %c0_i32, %arg0, %c0_i32_0 : i32, i32, i32
  }
  func.func @transform_1(%arg0: i32) -> (i32, i32, i32) {
    %c0_i32 = arith.constant 0 : i32
    %c0_i32_0 = arith.constant 0 : i32
    %c0_i32_1 = arith.constant 0 : i32
    return %c0_i32, %arg0, %c0_i32_0 : i32, i32, i32
  }
}

</mosaic_0001>

<bundles_post_ra>
// kernel: tpu_custom_call.1
= control target key start
LH: loop header
LB: loop body
LE: loop exit
PB: predicated region body
PF: predicated region fallthrough
CT: control target
= control target key end

     0   :  { %6 = vsyncpa [#allocation3], 0  ;;  %s1161_s0 = inlined_call_operand.hbm [shape: f32[6,16,128], index: 0, kind: input, shape index: {}]   ;;  %s1162_s1 = inlined_call_operand.hbm [shape: f32[12,16,128], index: 1, kind: output, shape index: {}]  }
   0x1   :  { %7 = vsyncpa [#allocation4], 0  ;;  %s799_s6 = smov [#allocation2]  }
   0x2   :  { %s13_s7 = sshll.u32 %s799_s6, 4  ;;  %s14_s7 = int_to_ptr.vmem [resolvable:$true] %s13_s7 }
   0x3   :  { %s763_s8 = scalar_lea.vmem %s14_s7, 1536  ;;  %p768_p1 = scmp.lt.s32.totalorder %s14_s7, %s14_s7 }
   0x4   :  { %p764_p0 = scmp.ne.s32.totalorder %s14_s7, %s763_s8  ;;  %p769_p2 = scmp.lt.s32.totalorder %s763_s8, %s763_s8 }
   0x6   :  { %p770_p3 = por %p769_p2, %p768_p1 }
   0x8   :  { %p771_p4 = pnand %p770_p3, %p764_p0 }
   0xa   :  { %774 = shalt.err (!%p771_p4)
}
   0xb   :  { %s800_s9 = smov 128   ;;  %s801_s10 = smov 8  }
   0xc   :  { %19 = dma.hbm_to_vmem [thread:$0]  %s1161_s0, 1536, %s14_s7, [#allocation3], %s800_s9, %s800_s9, %s801_s10  }
   0xd   :  { %795 = dma.done.wait [#allocation3], 1536  }
   0xe   :  { %796 = vsyncadd [#allocation3], 4294965760  ;;  %v23_v0 = vld [vmem:[#allocation2] sm:$0xff]  ;;  %v27_v1 = vld [vmem:[#allocation2 + $0x30] sm:$0xff]  ;;  %s808_s0 = smov [#allocation5]  }
   0xf   :  { %v33_v2 = vld [vmem:[#allocation2 + $0x10] sm:$0xff]  ;;  %v29_v3 = vsub.f32 %v23_v0, %v27_v1  ;;  %v37_v4 = vld [vmem:[#allocation2 + $0x40] sm:$0xff]  ;;  %v24_v9 = vld [vmem:[#allocation2 + $0x8] sm:$0xff]  ;;  %s677_s13 = sshll.u32 %s808_s0, 4  ;;  %s678_s13 = int_to_ptr.vmem [resolvable:$true] %s677_s13 }
  0x10   :  { %v43_v5 = vld [vmem:[#allocation2 + $0x20] sm:$0xff]  ;;  %v47_v6 = vld [vmem:[#allocation2 + $0x50] sm:$0xff]  ;;  %v39_v7 = vsub.f32 %v33_v2, %v37_v4  ;;  %v28_v10 = vld [vmem:[#allocation2 + $0x38] sm:$0xff]  ;;  %s775_s14 = scalar_lea.vmem %s678_s13, 3072  ;;  %p780_p6 = scmp.lt.s32.totalorder %s678_s13, %s678_s13 }
  0x11   :  { %v49_v8 = vsub.f32 %v43_v5, %v47_v6  ;;  %v34_v11 = vld [vmem:[#allocation2 + $0x18] sm:$0xff]  ;;  %v51_v12 = vmul.f32 %v29_v3, %v29_v3  ;;  %v30_v13 = vsub.f32 %v24_v9, %v28_v10  ;;  %v38_v14 = vld [vmem:[#allocation2 + $0x48] sm:$0xff]  ;;  %p776_p5 = scmp.ne.s32.totalorder %s678_s13, %s775_s14  ;;  %p781_p7 = scmp.lt.s32.totalorder %s775_s14, %s775_s14 }
  0x12   :  { %v44_v15 = vld [vmem:[#allocation2 + $0x28] sm:$0xff]  ;;  %v48_v16 = vld [vmem:[#allocation2 + $0x58] sm:$0xff]  ;;  %v825_v17 = vmul.f32 %v39_v7, %v39_v7  ;;  %v40_v19 = vsub.f32 %v34_v11, %v38_v14  ;;  %v517_v22 = vmul.f32 %v39_v7, %v29_v3 }
  0x13   :  { %v827_v18 = vmul.f32 %v49_v8, %v49_v8  ;;  %v50_v20 = vsub.f32 %v44_v15, %v48_v16  ;;  %v52_v21 = vmul.f32 %v30_v13, %v30_v13  ;;  %v829_v23 = vmul.f32 %v49_v8, %v29_v3  ;;  %p782_p8 = por %p781_p7, %p780_p6 }
  0x14   :  { %v831_v24 = vmul.f32 %v49_v8, %v39_v7  ;;  %v55_v25 = vadd.f32 %v825_v17, %v51_v12  ;;  %v834_v26 = vmul.f32 %v40_v19, %v40_v19  ;;  %v518_v27 = vmul.f32 %v40_v19, %v30_v13 }
  0x15   :  { %v836_v28 = vmul.f32 %v50_v20, %v50_v20  ;;  %v838_v29 = vmul.f32 %v50_v20, %v30_v13  ;;  %v840_v30 = vmul.f32 %v50_v20, %v40_v19  ;;  %p783_p9 = pnand %p782_p8, %p776_p5 }
  0x16   :  { %v59_v31 = vadd.f32 %v827_v18, %v55_v25  ;;  %v56_v32 = vadd.f32 %v834_v26, %v52_v21 }
  0x18   :  { %743 = vrsqrt.f32 %v59_v31  ;;  %v60_v33 = vadd.f32 %v836_v28, %v56_v32  ;;  %vm67_vm0 = vcmp.eq.f32.partialorder %v59_v31, inf  ;;  %v70_v35 = vand.u32 2147483648, %v59_v31 }
  0x19   :  { %vm69_vm1 = vcmp.eq.f32.partialorder %v59_v31, 0.0  ;;  %v855_v39 = vadd.f32 -0.0022765736, %v59_v31 }
  0x1a   :  { %745 = vrsqrt.f32 %v60_v33  ;;  %vm74_vm2 = vcmp.eq.f32.partialorder %v60_v33, inf  ;;  %v77_v47 = vand.u32 2147483648, %v60_v33  ;;  %vm76_vm3 = vcmp.eq.f32.partialorder %v60_v33, 0.0 }
  0x1b   :  { %v887_v62 = vadd.f32 -0.0022765736, %v60_v33 }
  0x25   :  { %v845_v34 = vpop.eup %743 }
  0x26   :  { %v849_v36 = vmul.f32 %v845_v34, %v845_v34  ;;  %v66_v37 = vmul.f32 %v845_v34, %v59_v31  ;;  %v853_v38 = vmul.f32 0.14314036, %v845_v34 }
  0x27   :  { %v857_v40 = vpop.eup %745 }
  0x28   :  { %v68_v41 = vsel %vm67_vm0, %v59_v31, %v66_v37  ;;  %v511_v42 = vmul.f32 0.0068297205, %v849_v36  ;;  %v527_v43 = vmul.f32 %v853_v38, %v51_v12  ;;  %v863_v45 = vmul.f32 %v857_v40, %v857_v40 }
  0x29   :  { %v71_v44 = vsel %vm69_vm1, %v70_v35, %v68_v41  ;;  %v73_v46 = vmul.f32 %v857_v40, %v60_v33  ;;  %v871_v50 = vmul.f32 %v517_v22, %v853_v38  ;;  %v877_v54 = vmul.f32 0.14314036, %v857_v40 }
  0x2a   :  { %v866_v48 = vmul.f32 -20.95845, %v71_v44  ;;  %v868_v49 = vmul.f32 -0.04771345, %v71_v44  ;;  %v873_v51 = vadd.f32 -1.0, %v511_v42  ;;  %v927_v20 = vmul.f32 %v829_v23, %v853_v38 }
  0x2b   :  { %v75_v52 = vsel %vm74_vm2, %v60_v33, %v73_v46  ;;  %v512_v53 = vmul.f32 0.0068297205, %v863_v45  ;;  %v528_v3 = vmul.f32 %v877_v54, %v52_v21  ;;  %v919_v16 = vmul.f32 %v518_v27, %v877_v54 }
  0x2c   :  { %v1164_v55 = vand.u32 2147483647, %v866_v48  ;;  %v84_v56 = vand.u32 2139095040, %v866_v48  ;;  %v523_v57 = vmul.f32 %v873_v51, %v51_v12  ;;  %v883_v58 = vadd.f32 %v527_v43, %v868_v49 }
  0x2d   :  { %v78_v59 = vsel %vm76_vm3, %v77_v47, %v75_v52  ;;  %v889_v63 = vadd.f32 -1.0, %v512_v53  ;;  %v901_v6 = vmul.f32 %v873_v51, %v517_v22  ;;  %1170 = vst [vmem:[#allocation9_spill] sm:$0xff] %v919_v16  ;;  %v923_v19 = vmul.f32 %v873_v51, %v829_v23 }
  0x2e   :  { %v85_v60 = vshrl.u32 %v84_v56, 23  ;;  %v88_v61 = vand.u32 8388607, %v1164_v55  ;;  %v892_v0 = vadd.f32 %v855_v39, %v523_v57  ;;  %v894_v1 = vmul.f32 -20.95845, %v78_v59 }
  0x2f   :  { %v896_v2 = vmul.f32 -0.04771345, %v78_v59  ;;  %v524_v5 = vmul.f32 %v889_v63, %v52_v21  ;;  %v916_v15 = vmul.f32 %v889_v63, %v518_v27  ;;  %v933_v31 = vmul.f32 %v889_v63, %v838_v29 }
  0x30   :  { %v705_v4 = vadd.s32 4294967169, %v85_v60  ;;  %v89_v7 = vor.u32 8388608, %v88_v61  ;;  %v1163_v8 = vand.u32 2147483647, %v894_v1  ;;  %v187_v9 = vand.u32 2139095040, %v894_v1 }
  0x31   :  { %v906_v11 = vadd.f32 %v887_v62, %v524_v5  ;;  %v909_v12 = vadd.f32 %v528_v3, %v896_v2  ;;  %1169 = vst [vmem:[#allocation8_spill] sm:$0xff] %v916_v15  ;;  %1171 = vst [vmem:[#allocation10_spill] sm:$0xff] %v933_v31  ;;  %v937_v27 = vmul.f32 %v838_v29, %v877_v54  ;;  %v802_v44 = vmov 683565275  }
  0x32   :  { %v91_v10 = vadd.s32 1, %v705_v4  ;;  %v188_v13 = vshrl.u32 %v187_v9, 23  ;;  %v913_v14 = vand.u32 8388607, %v1163_v8  ;;  %v929_v22 = vshll.u32 %v89_v7, 8 }
  0x33   :  { %1172 = vst [vmem:[#allocation11_spill] sm:$0xff] %v937_v27  ;;  %v592_v35 = vmul.f32 %v873_v51, %v825_v17  ;;  %v944_v41 = vmul.f32 %v853_v38, %v825_v17  ;;  %v948_v42 = vmul.f32 %v889_v63, %v834_v26  ;;  %v803_v47 = vmov 2475754826  }
  0x34   :  { %vm92_vm4 = vcmp.gt.s32.totalorder %v91_v10, 0  ;;  %v709_v25 = vadd.s32 4294967169, %v188_v13  ;;  %v192_v23 = vor.u32 8388608, %v913_v14  ;;  %v804_v52 = vmov 2131351028  }
  0x35   :  { %v93_v21 = vsel %vm92_vm4, %v91_v10, 0  ;;  %v805_v56 = vmov 2102212464   ;;  %v806_v59 = vmov 920167782   ;;  %vm83_vm2 = vcmp.lt.s32.totalorder %v866_v48, 0 }
  0x36   :  { %v94_v32 = vshrl.u32 %v93_v21, 5  ;;  %v95_v33 = vand.u32 31, %v93_v21  ;;  %v194_v37 = vadd.s32 1, %v709_v25  ;;  %v807_v7 = vmov 1326507024  }
  0x37   :  { %vm186_vm4 = vcmp.lt.s32.totalorder %v894_v1, 0 }
  0x38   :  { %v96_v43 = vsub.s32 32, %v95_v33  ;;  %v98_v46 = vshll.u32 %v802_v44, %v95_v33  ;;  %v101_v29 = vshll.u32 %v803_v47, %v95_v33  ;;  %v104_v53 = vshll.u32 %v804_v52, %v95_v33 }
  0x39   :  { %v107_v57 = vshll.u32 %v805_v56, %v95_v33  ;;  %v110_v60 = vshll.u32 %v806_v59, %v95_v33  ;;  %vm113_vm5 = vcmp.lt.s32.totalorder %v94_v32, 1  ;;  %vm114_vm6 = vcmp.lt.s32.totalorder %v94_v32, 2 }
  0x3a   :  { %v97_v61 = vshrl.u32 %v802_v44, %v96_v43  ;;  %v99_v17 = vshrl.u32 %v803_v47, %v96_v43  ;;  %v102_v3 = vshrl.u32 %v804_v52, %v96_v43  ;;  %v105_v4 = vshrl.u32 %v805_v56, %v96_v43 }
  0x3b   :  { %v108_v5 = vshrl.u32 %v806_v59, %v96_v43  ;;  %v111_v9 = vshrl.u32 %v807_v7, %v96_v43  ;;  %vm115_vm7 = vcmp.lt.s32.totalorder %v94_v32, 3  ;;  %vm116_vm8 = vcmp.lt.s32.totalorder %v94_v32, 4 }
  0x3c   :  { %v100_v10 = vor.u32 %v99_v17, %v98_v46  ;;  %v103_v13 = vor.u32 %v102_v3, %v101_v29  ;;  %v106_v14 = vor.u32 %v105_v4, %v104_v53  ;;  %vm195_vm9 = vcmp.gt.s32.totalorder %v194_v37, 0 }
  0x3d   :  { %v109_v21 = vor.u32 %v108_v5, %v107_v57  ;;  %v112_v25 = vor.u32 %v111_v9, %v110_v60  ;;  %v196_v8 = vsel %vm195_vm9, %v194_v37, 0  ;;  %v951_v33 = vadd.f32 %v855_v39, %v592_v35 }
  0x3e   :  { %v117_v55 = vsel %vm113_vm5, %v97_v61, %v100_v10  ;;  %v118_v27 = vsel %vm116_vm8, %v106_v14, 2102212464  ;;  %v121_v31 = vsel %vm113_vm5, %v100_v10, %v103_v13  ;;  %v125_v16 = vsel %vm113_vm5, %v103_v13, %v106_v14 }
  0x3f   :  { %v119_v43 = vsel %vm115_vm7, %v103_v13, %v118_v27  ;;  %v122_v15 = vsel %vm116_vm8, %v109_v21, 920167782  ;;  %v126_v46 = vsel %vm116_vm8, %v112_v25, 1326507024  ;;  %v197_v29 = vshrl.u32 %v196_v8, 5 }
  0x40   :  { %v120_v53 = vsel %vm114_vm6, %v117_v55, %v119_v43  ;;  %v123_v57 = vsel %vm115_vm7, %v106_v14, %v122_v15  ;;  %v127_v37 = vsel %vm115_vm7, %v109_v21, %v126_v46  ;;  %v198_v35 = vand.u32 31, %v196_v8 }
  0x41   :  { %v124_v60 = vsel %vm114_vm6, %v121_v31, %v123_v57  ;;  %v128_v61 = vsel %vm114_vm6, %v125_v16, %v127_v37  ;;  %v136_v17 = vmul.u32 %v929_v22, %v120_v53  ;;  %v963_v3 = vshll.u32 %v192_v23, 8 }
  0x42   :  { %v966_v27 = vmul.u32.u64.low %v929_v22, %v128_v61  ;;  %v967_v4 = vmul.u32.u64.high %v929_v22, %v128_v61, %v966_v27  ;;  %v970_v5 = vmul.u32.u64.low %v929_v22, %v124_v60  ;;  %v971_v55 = vmul.u32.u64.high %v929_v22, %v124_v60, %v970_v5 }
  0x43   :  { %v199_v15 = vsub.s32 32, %v198_v35  ;;  %v201_v9 = vshll.u32 %v802_v44, %v198_v35  ;;  %v204_v8 = vshll.u32 %v803_v47, %v198_v35  ;;  %v207_v10 = vshll.u32 %v804_v52, %v198_v35 }
  0x44   :  { %v210_v31 = vshll.u32 %v805_v56, %v198_v35  ;;  %v213_v32 = vshll.u32 %v806_v59, %v198_v35  ;;  %vm216_vm10 = vcmp.lt.s32.totalorder %v197_v29, 1  ;;  %vm217_vm11 = vcmp.lt.s32.totalorder %v197_v29, 2 }
  0x45   :  { %v200_v16 = vshrl.u32 %v802_v44, %v199_v15  ;;  %v202_v23 = vshrl.u32 %v803_v47, %v199_v15  ;;  %v205_v13 = vshrl.u32 %v804_v52, %v199_v15  ;;  %v208_v14 = vshrl.u32 %v805_v56, %v199_v15 }
  0x46   :  { %vm138_vm12 = vc.u32 %v967_v4, %v970_v5  ;;  %v139_v21 = vadd.s32 1, %v971_v55  ;;  %v211_v22 = vshrl.u32 %v806_v59, %v199_v15  ;;  %vm218_vm13 = vcmp.lt.s32.totalorder %v197_v29, 3 }
  0x47   :  { %v203_v25 = vor.u32 %v202_v23, %v201_v9  ;;  %v206_v43 = vor.u32 %v205_v13, %v204_v8  ;;  %v209_v46 = vor.u32 %v208_v14, %v207_v10  ;;  %v214_v53 = vshrl.u32 %v807_v7, %v199_v15 }
  0x48   :  { %v140_v57 = vsel %vm138_vm12, %v139_v21, %v971_v55  ;;  %v212_v37 = vor.u32 %v211_v22, %v210_v31  ;;  %vm219_vm14 = vcmp.lt.s32.totalorder %v197_v29, 4  ;;  %v980_v44 = vadd.f32 %v944_v41, %v868_v49 }
  0x49   :  { %v141_v47 = vadd.s32 %v140_v57, %v136_v17  ;;  %v215_v52 = vor.u32 %v214_v53, %v213_v32  ;;  %v220_v56 = vsel %vm216_vm10, %v200_v16, %v203_v25  ;;  %v221_v35 = vsel %vm219_vm14, %v209_v46, 2102212464 }
  0x4a   :  { %v222_v59 = vsel %vm218_vm13, %v206_v43, %v221_v35  ;;  %v224_v60 = vsel %vm216_vm10, %v203_v25, %v206_v43  ;;  %v225_v61 = vsel %vm219_vm14, %v212_v37, 920167782  ;;  %v228_v7 = vsel %vm216_vm10, %v206_v43, %v209_v46 }
  0x4b   :  { %v142_v27 = vadd.s32 536870912, %v141_v47  ;;  %v226_v55 = vsel %vm218_vm13, %v209_v46, %v225_v61  ;;  %v229_v15 = vsel %vm219_vm14, %v215_v52, 1326507024  ;;  %v223_v9 = vsel %vm217_vm11, %v220_v56, %v222_v59 }
  0x4c   :  { %v227_v41 = vsel %vm217_vm11, %v224_v60, %v226_v55  ;;  %v230_v17 = vsel %vm218_vm13, %v212_v37, %v229_v15  ;;  %v992_v8 = vadd.f32 %v887_v62, %v948_v42  ;;  %v597_v14 = vmul.f32 %v877_v54, %v834_v26 }
  0x4d   :  { %v994_v10 = vshrl.u32 %v142_v27, 30  ;;  %v231_v31 = vsel %vm217_vm11, %v228_v7, %v230_v17  ;;  %v998_v32 = vmul.u32.u64.low %v963_v3, %v227_v41  ;;  %v999_v16 = vmul.u32.u64.high %v963_v3, %v227_v41, %v998_v32 }
  0x4e   :  { %v1002_v23 = vmul.u32.u64.low %v963_v3, %v231_v31  ;;  %v1003_v13 = vmul.u32.u64.high %v963_v3, %v231_v31, %v1002_v23  ;;  %v1009_v21 = vmul.f32 %v873_v51, %v831_v24  ;;  %v239_v29 = vmul.u32 %v963_v3, %v223_v9 }
  0x4f   :  { %v144_v42 = vshll.u32 %v994_v10, 30  ;;  %v1015_v22 = vmul.f32 %v831_v24, %v853_v38  ;;  %v1019_v25 = vmul.f32 %v889_v63, %v840_v30  ;;  %v1022_v43 = vadd.f32 %v597_v14, %v896_v2 }
  0x50   :  { %v1026_v26 = vmul.f32 %v840_v30, %v877_v54  ;;  %v644_v46 = vmul.f32 %v873_v51, %v827_v18  ;;  %v648_v3 = vmul.f32 %v853_v38, %v827_v18  ;;  %v242_v24 = vadd.s32 1, %v999_v16 }
  0x51   :  { %v145_v53 = vsub.s32 %v141_v47, %v144_v42  ;;  %v645_v57 = vmul.f32 %v889_v63, %v836_v28  ;;  %vm241_vm15 = vc.u32 %v1003_v13, %v998_v32  ;;  %v649_v38 = vmul.f32 %v877_v54, %v836_v28 }
  0x52   :  { %v1037_v37 = vadd.f32 %v855_v39, %v644_v46  ;;  %v243_v30 = vsel %vm241_vm15, %v242_v24, %v999_v16  ;;  %v1041_v51 = vadd.f32 %v648_v3, %v868_v49  ;;  %v137_v7 = vadd.s32 %v970_v5, %v967_v4 }
  0x53   :  { %v147_v52 = vsub.s32 0, %v145_v53  ;;  %v244_v56 = vadd.s32 %v243_v30, %v239_v29  ;;  %v1044_v18 = vadd.f32 %v887_v62, %v645_v57  ;;  %v1049_v35 = vadd.f32 %v649_v38, %v896_v2 }
  0x54   :  { %v240_v29 = vadd.s32 %v998_v32, %v1003_v13  ;;  %v167_v46 = vsub.s32 4, %v994_v10  ;;  %v1173_v57 = vand.u32 2147483647, %v866_v48  ;;  %vm173_vm12 = vweird.f32 %v866_v48 }
  0x55   :  { %v706_v47 = vmin.u32 %v147_v52, %v145_v53  ;;  %v245_v63 = vadd.s32 536870912, %v244_v56  ;;  %vm276_vm13 = vweird.f32 %v894_v1 }
  0x56   :  { %vm82_vm3 = vcmp.le.f32.partialorder %v1173_v57, 0.7853982 }
  0x57   :  { %v149_v39 = vclz %v706_v47  ;;  %v246_v59 = vshrl.u32 %v245_v63, 30  ;;  %v168_v47 = vsel %vm83_vm2, %v167_v46, %v994_v10 }
  0x59   :  { %v707_v60 = vadd.s32 4294967294, %v149_v39  ;;  %v247_v61 = vshll.u32 %v246_v59, 30 }
  0x5b   :  { %vm708_vm0 = vcmp.lt.s32.totalorder %v707_v60, 0  ;;  %v248_v27 = vsub.s32 %v244_v56, %v247_v61  ;;  %v170_v61 = vsel %vm82_vm3, 0, %v168_v47 }
  0x5c   :  { %v152_v49 = vsel %vm708_vm0, 0, %v707_v60 }
  0x5d   :  { %v153_v62 = vsub.s32 32, %v152_v49  ;;  %v154_v55 = vshll.u32 %v145_v53, %v152_v49  ;;  %v157_v15 = vsub.s32 4294967266, %v152_v49  ;;  %v250_v9 = vsub.s32 0, %v248_v27 }
  0x5e   :  { %v270_v49 = vsub.s32 4, %v246_v59 }
  0x5f   :  { %v155_v28 = vshrl.u32 %v137_v7, %v153_v62  ;;  %v158_v54 = vadd.s32 127, %v157_v15  ;;  %v710_v41 = vmin.u32 %v250_v9, %v248_v27  ;;  %v174_v9 = vand.u32 3, %v170_v61 }
  0x60   :  { %v271_v10 = vsel %vm186_vm4, %v270_v49, %v246_v59 }
  0x61   :  { %v156_v17 = vor.u32 %v155_v28, %v154_v55  ;;  %v159_v2 = vshll.u32 %v158_v54, 23  ;;  %v252_v31 = vclz %v710_v41  ;;  %v1174_v55 = vand.u32 2147483647, %v894_v1 }
  0x62   :  { %v495_v41 = vmul.f32 %v845_v34, %v849_v36  ;;  %vm179_vm6 = vcmp.eq.s32.totalorder %v174_v9, 2  ;;  %vm176_vm8 = vcmp.eq.s32.totalorder %v174_v9, 0  ;;  %vm175_vm10 = vcmp.lt.s32.totalorder %v174_v9, 2 }
  0x63   :  { %v160_v16 = vor.u32 4788187, %v159_v2  ;;  %v163_v23 = vcvt.s32.f32 %v156_v17  ;;  %v711_v14 = vadd.s32 4294967294, %v252_v31  ;;  %vm185_vm5 = vcmp.le.f32.partialorder %v1174_v55, 0.7853982 }
  0x64   :  { %v273_v2 = vsel %vm185_vm5, 0, %v271_v10  ;;  %v497_v59 = vmul.f32 -0.62831855, %v495_v41  ;;  %v496_v34 = vmul.f32 %v857_v40, %v863_v45 }
  0x65   :  { %v161_v42 = vand.u32 2147483647, %v160_v16  ;;  %vm712_vm1 = vcmp.lt.s32.totalorder %v711_v14, 0  ;;  %v484_v16 = vadd.s32 3, %v273_v2 }
  0x66   :  { %v255_v5 = vsel %vm712_vm1, 0, %v711_v14 }
  0x67   :  { %v164_v4 = vmul.f32 %v163_v23, %v161_v42  ;;  %v256_v3 = vsub.s32 32, %v255_v5  ;;  %v257_v53 = vshll.u32 %v248_v27, %v255_v5  ;;  %v260_v24 = vsub.s32 4294967266, %v255_v5 }
  0x68   :  { %v380_v27 = vadd.s32 3, %v170_v61 }
  0x69   :  { %v165_v52 = vxor.u32 2147483648, %v164_v4  ;;  %v258_v30 = vshrl.u32 %v240_v29, %v256_v3  ;;  %v261_v56 = vadd.s32 127, %v260_v24  ;;  %v485_v3 = vand.u32 3, %v484_v16 }
  0x6a   :  { %v381_v28 = vand.u32 3, %v380_v27 }
  0x6b   :  { %v166_v38 = vsel %vm83_vm2, %v165_v52, %v164_v4  ;;  %v259_v13 = vor.u32 %v258_v30, %v257_v53  ;;  %v262_v63 = vshll.u32 %v261_v56, 23  ;;  %v277_v4 = vand.u32 3, %v273_v2 }
  0x6c   :  { %v169_v32 = vsel %vm82_vm3, %v866_v48, %v166_v38  ;;  %vm386_vm7 = vcmp.eq.s32.totalorder %v381_v28, 2  ;;  %vm383_vm9 = vcmp.eq.s32.totalorder %v381_v28, 0  ;;  %vm382_vm11 = vcmp.lt.s32.totalorder %v381_v28, 2 }
  0x6d   :  { %747 = vcosq.f32 %v169_v32  ;;  %v263_v39 = vor.u32 4788187, %v262_v63  ;;  %v266_v60 = vcvt.s32.f32 %v259_v13  ;;  %v498_v30 = vmul.f32 -0.62831855, %v496_v34 }
  0x6e   :  { %749 = vsinq.f32 %v169_v32  ;;  %vm278_vm14 = vcmp.lt.s32.totalorder %v277_v4, 2  ;;  %vm279_vm15 = vcmp.eq.s32.totalorder %v277_v4, 0  ;;  %vm282_vm0 = vcmp.eq.s32.totalorder %v277_v4, 2 }
  0x6f   :  { %v264_v7 = vand.u32 2147483647, %v263_v39  ;;  %vm486_vm1 = vcmp.lt.s32.totalorder %v485_v3, 2  ;;  %vm487_vm2 = vcmp.eq.s32.totalorder %v485_v3, 0  ;;  %vm490_vm3 = vcmp.eq.s32.totalorder %v485_v3, 2 }
  0x71   :  { %v267_v62 = vmul.f32 %v266_v60, %v264_v7 }
  0x73   :  { %v268_v15 = vxor.u32 2147483648, %v267_v62 }
  0x75   :  { %v269_v54 = vsel %vm186_vm4, %v268_v15, %v267_v62 }
  0x76   :  { %v272_v17 = vsel %vm185_vm5, %v894_v1, %v269_v54 }
  0x77   :  { %751 = vcosq.f32 %v272_v17 }
  0x78   :  { %753 = vsinq.f32 %v272_v17 }
  0x7a   :  { %v748_v31 = vpop.eup %747 }
  0x7b   :  { %v750_v23 = vpop.eup %749  ;;  %v180_v14 = vxor.u32 2147483648, %v748_v31 }
  0x7c   :  { %v177_v42 = vxor.u32 2147483648, %v750_v23 }
  0x7d   :  { %v181_v36 = vsel %vm179_vm6, %v180_v14, %v750_v23  ;;  %v388_v29 = vsel %vm386_vm7, %v180_v14, %v750_v23 }
  0x7e   :  { %v178_v5 = vsel %vm176_vm8, %v748_v31, %v177_v42  ;;  %v385_v46 = vsel %vm383_vm9, %v748_v31, %v177_v42 }
  0x7f   :  { %v182_v53 = vsel %vm175_vm10, %v178_v5, %v181_v36  ;;  %v389_v24 = vsel %vm382_vm11, %v385_v46, %v388_v29 }
  0x80   :  { %v183_v57 = vsel %vm173_vm12, nan, %v182_v53  ;;  %v390_v52 = vsel %vm173_vm12, nan, %v389_v24 }
  0x81   :  { %v1070_v56 = vmul.f32 %v497_v59, %v183_v57  ;;  %v1072_v38 = vmul.f32 %v497_v59, %v390_v52 }
  0x83   :  { %v503_v40 = vsub.f32 0.0, %v1070_v56  ;;  %v505_v45 = vsub.f32 0.0, %v1072_v38  ;;  %v539_v48 = vmul.f32 %v892_v0, %v1070_v56  ;;  %v541_v47 = vmul.f32 %v883_v58, %v1072_v38 }
  0x84   :  { %v561_v32 = vmul.f32 %v901_v6, %v1070_v56  ;;  %v563_v13 = vmul.f32 %v871_v50, %v1072_v38  ;;  %v583_v63 = vmul.f32 %v923_v19, %v1070_v56  ;;  %v585_v39 = vmul.f32 %v927_v20, %v1072_v38  ;;  %v752_v60 = vpop.eup %751 }
  0x85   :  { %v531_v61 = vmul.f32 %v883_v58, %v503_v40  ;;  %v533_v7 = vmul.f32 %v892_v0, %v505_v45  ;;  %v543_v49 = vsub.f32 %v539_v48, %v541_v47  ;;  %v552_v27 = vmul.f32 %v871_v50, %v503_v40  ;;  %v754_v62 = vpop.eup %753  ;;  %v1175_v48 = vld [vmem:[#allocation8_spill] sm:$0xff] }
  0x86   :  { %v283_v55 = vxor.u32 2147483648, %v752_v60  ;;  %v554_v15 = vmul.f32 %v901_v6, %v505_v45  ;;  %v565_v10 = vsub.f32 %v561_v32, %v563_v13  ;;  %v574_v9 = vmul.f32 %v927_v20, %v503_v40  ;;  %v1177_v13 = vld [vmem:[#allocation10_spill] sm:$0xff] }
  0x87   :  { %v535_v28 = vadd.f32 %v533_v7, %v531_v61  ;;  %v280_v54 = vxor.u32 2147483648, %v754_v62  ;;  %546 = vst [vmem:[#allocation5 + $0x10] sm:$0xff] %v543_v49  ;;  %v576_v41 = vmul.f32 %v923_v19, %v505_v45  ;;  %v587_v17 = vsub.f32 %v583_v63, %v585_v39 }
  0x88   :  { %v284_v58 = vsel %vm282_vm0, %v283_v55, %v754_v62  ;;  %v492_v0 = vsel %vm490_vm3, %v283_v55, %v754_v62  ;;  %v556_v2 = vadd.f32 %v554_v15, %v552_v27  ;;  %568 = vst [vmem:[#allocation5 + $0x30] sm:$0xff] %v565_v10  ;;  %v600_v50 = vmul.f32 %v980_v44, %v503_v40 }
  0x89   :  { %537 = vst [vmem:[#allocation5] sm:$0xff] %v535_v28  ;;  %v281_v6 = vsel %vm279_vm15, %v752_v60, %v280_v54  ;;  %v489_v31 = vsel %vm487_vm2, %v752_v60, %v280_v54  ;;  %v578_v20 = vadd.f32 %v576_v41, %v574_v9  ;;  %590 = vst [vmem:[#allocation5 + $0x50] sm:$0xff] %v587_v17 }
  0x8a   :  { %v602_v16 = vmul.f32 %v951_v33, %v505_v45  ;;  %v285_v19 = vsel %vm278_vm14, %v281_v6, %v284_v58  ;;  %v493_v23 = vsel %vm486_vm1, %v489_v31, %v492_v0  ;;  %559 = vst [vmem:[#allocation5 + $0x20] sm:$0xff] %v556_v2  ;;  %v610_v14 = vmul.f32 %v951_v33, %v1070_v56 }
  0x8b   :  { %v612_v59 = vmul.f32 %v980_v44, %v1072_v38  ;;  %v286_v42 = vsel %vm276_vm13, nan, %v285_v19  ;;  %v494_v34 = vsel %vm276_vm13, nan, %v493_v23  ;;  %581 = vst [vmem:[#allocation5 + $0x40] sm:$0xff] %v578_v20  ;;  %v624_v29 = vmul.f32 %v1015_v22, %v503_v40 }
  0x8c   :  { %v604_v36 = vadd.f32 %v602_v16, %v600_v50  ;;  %v500_v4 = vmul.f32 %v498_v30, %v286_v42  ;;  %v1111_v5 = vmul.f32 %v498_v30, %v494_v34  ;;  %v626_v3 = vmul.f32 %v1009_v21, %v505_v45 }
  0x8d   :  { %v614_v46 = vsub.f32 %v610_v14, %v612_v59  ;;  %v634_v33 = vmul.f32 %v1009_v21, %v1070_v56  ;;  %v636_v44 = vmul.f32 %v1015_v22, %v1072_v38  ;;  %v652_v1 = vmul.f32 %v1041_v51, %v503_v40  ;;  %v1176_v21 = vld [vmem:[#allocation9_spill] sm:$0xff]  ;;  %v1178_v40 = vld [vmem:[#allocation11_spill] sm:$0xff] }
  0x8e   :  { %608 = vst [vmem:[#allocation5 + $0x60] sm:$0xff] %v604_v36  ;;  %v654_v53 = vmul.f32 %v1037_v37, %v505_v45  ;;  %v504_v24 = vsub.f32 0.0, %v500_v4  ;;  %v506_v57 = vsub.f32 0.0, %v1111_v5  ;;  %v540_v52 = vmul.f32 %v906_v11, %v500_v4 }
  0x8f   :  { %v542_v30 = vmul.f32 %v909_v12, %v1111_v5  ;;  %618 = vst [vmem:[#allocation5 + $0x70] sm:$0xff] %v614_v46  ;;  %v562_v47 = vmul.f32 %v1175_v48, %v500_v4  ;;  %v564_v32 = vmul.f32 %v1176_v21, %v1111_v5  ;;  %v584_v22 = vmul.f32 %v1177_v13, %v500_v4 }
  0x90   :  { %v586_v63 = vmul.f32 %v1178_v40, %v1111_v5  ;;  %v532_v45 = vmul.f32 %v909_v12, %v504_v24  ;;  %v534_v39 = vmul.f32 %v906_v11, %v506_v57  ;;  %v553_v61 = vmul.f32 %v1176_v21, %v504_v24 }
  0x91   :  { %v544_v60 = vsub.f32 %v540_v52, %v542_v30  ;;  %v555_v7 = vmul.f32 %v1175_v48, %v506_v57  ;;  %v566_v49 = vsub.f32 %v562_v47, %v564_v32  ;;  %v575_v27 = vmul.f32 %v1178_v40, %v504_v24 }
  0x92   :  { %v577_v62 = vmul.f32 %v1177_v13, %v506_v57  ;;  %v536_v55 = vadd.f32 %v534_v39, %v532_v45  ;;  %v588_v15 = vsub.f32 %v584_v22, %v586_v63  ;;  %v601_v10 = vmul.f32 %v1022_v43, %v504_v24 }
  0x93   :  { %547 = vst [vmem:[#allocation5 + $0x18] sm:$0xff] %v544_v60  ;;  %v603_v9 = vmul.f32 %v992_v8, %v506_v57  ;;  %v557_v12 = vadd.f32 %v555_v7, %v553_v61  ;;  %569 = vst [vmem:[#allocation5 + $0x38] sm:$0xff] %v566_v49  ;;  %v611_v28 = vmul.f32 %v992_v8, %v500_v4 }
  0x94   :  { %v579_v11 = vadd.f32 %v577_v62, %v575_v27  ;;  %v613_v54 = vmul.f32 %v1022_v43, %v1111_v5  ;;  %538 = vst [vmem:[#allocation5 + $0x8] sm:$0xff] %v536_v55  ;;  %591 = vst [vmem:[#allocation5 + $0x58] sm:$0xff] %v588_v15  ;;  %v628_v17 = vadd.f32 %v626_v3, %v624_v29 }
  0x95   :  { %v605_v41 = vadd.f32 %v603_v9, %v601_v10  ;;  %v625_v58 = vmul.f32 %v1026_v26, %v504_v24  ;;  %v627_v0 = vmul.f32 %v1019_v25, %v506_v57  ;;  %560 = vst [vmem:[#allocation5 + $0x28] sm:$0xff] %v557_v12  ;;  %v638_v50 = vsub.f32 %v634_v33, %v636_v44 }
  0x96   :  { %582 = vst [vmem:[#allocation5 + $0x48] sm:$0xff] %v579_v11  ;;  %v615_v2 = vsub.f32 %v611_v28, %v613_v54  ;;  %v635_v6 = vmul.f32 %v1019_v25, %v500_v4  ;;  %v637_v8 = vmul.f32 %v1026_v26, %v1111_v5  ;;  %632 = vst [vmem:[#allocation5 + $0x80] sm:$0xff] %v628_v17 }
  0x97   :  { %609 = vst [vmem:[#allocation5 + $0x68] sm:$0xff] %v605_v41  ;;  %v629_v43 = vadd.f32 %v627_v0, %v625_v58  ;;  %v656_v31 = vadd.f32 %v654_v53, %v652_v1  ;;  %v653_v20 = vmul.f32 %v1049_v35, %v504_v24  ;;  %v655_v16 = vmul.f32 %v1044_v18, %v506_v57 }
  0x98   :  { %619 = vst [vmem:[#allocation5 + $0x78] sm:$0xff] %v615_v2  ;;  %642 = vst [vmem:[#allocation5 + $0x90] sm:$0xff] %v638_v50  ;;  %v639_v19 = vsub.f32 %v635_v6, %v637_v8  ;;  %v662_v23 = vmul.f32 %v1037_v37, %v1070_v56  ;;  %v664_v25 = vmul.f32 %v1041_v51, %v1072_v38 }
  0x99   :  { %v663_v14 = vmul.f32 %v1044_v18, %v500_v4  ;;  %633 = vst [vmem:[#allocation5 + $0x88] sm:$0xff] %v629_v43  ;;  %660 = vst [vmem:[#allocation5 + $0xa0] sm:$0xff] %v656_v31  ;;  %v657_v26 = vadd.f32 %v655_v16, %v653_v20  ;;  %v665_v59 = vmul.f32 %v1049_v35, %v1111_v5 }
  0x9a   :  { %643 = vst [vmem:[#allocation5 + $0x98] sm:$0xff] %v639_v19  ;;  %v666_v42 = vsub.f32 %v662_v23, %v664_v25 }
  0x9b   :  { %661 = vst [vmem:[#allocation5 + $0xa8] sm:$0xff] %v657_v26  ;;  %v667_v34 = vsub.f32 %v663_v14, %v665_v59 }
  0x9c   :  { %670 = vst [vmem:[#allocation5 + $0xb0] sm:$0xff] %v666_v42 }
  0x9d   :  { %671 = vst [vmem:[#allocation5 + $0xb8] sm:$0xff] %v667_v34 }
  0x9e   :  { %786 = shalt.err (!%p783_p9)
}
  0x9f   :  { %683 = dma.vmem_to_hbm [thread:$0]  %s678_s13, 3072, %s1162_s1, [#allocation4], %s800_s9, %s800_s9, %s801_s10  }
  0xa0   :  { %797 = dma.done.wait [#allocation4], 3072  }
  0xa1   :  { %798 = vsyncadd [#allocation4], 4294964224 }
  0xa2   :  { %687 = vsyncpa [#allocation3], 1 }
  0xa3   :  { %688 = vsyncpa [#allocation4], 1 }

</bundles_post_ra>
